<compile_context>
chip_gen: v5e
topology: v5e:2x2
jax: 0.10.0
libtpu: 0.0.40
codegen_flags: <defaults>
</compile_context>

<pallas_src>
import jax
import jax.numpy as jnp
from jax.experimental import pallas as pl
from jax.experimental.pallas import tpu as pltpu


def _exp_rbf_kernel(x_ref, o_ref):
    # Exp(x) = exp(-x**2)  — pure elementwise: VPU square/negate, EUP exp.
    x = x_ref[...]
    o_ref[...] = jnp.exp(-(x * x))


def _cdiv(a: int, b: int) -> int:
    return -(-a // b)


def _round_up(a: int, b: int) -> int:
    return _cdiv(a, b) * b


def _is_v7x() -> bool:
    try:
        return "v7" in jax.devices()[0].device_kind.lower()
    except Exception:
        return False


def exp_rbf(x: jax.Array, *, max_lanes: int = 1024, donate_input: bool = False) -> jax.Array:
    """Applies the exponential radial basis exp(-x**2) elementwise."""
    orig_shape = x.shape
    n = x.size

    # Non-float dtypes: jnp.exp promotes to float anyway; compute/return f32.
    if not jnp.issubdtype(x.dtype, jnp.floating):
        x = x.astype(jnp.float32)
        donate_input = False
    dtype = x.dtype

    if n == 0:
        return jnp.reshape(x, orig_shape)

    itemsize = jnp.dtype(dtype).itemsize
    # Dtype-aware sublane minimum: 8 (f32), 16 (bf16/f16), 32 (int8/fp8).
    min_rows = (8 * 4) // itemsize

    # Constant-byte buffers: ~2 MiB each (safe on v5e/v6e), ~4 MiB on v7x
    # (3.2 TB/s HBM -> halve the step count to keep the 0.35 us/step amortized).
    tile_bytes = (4 << 20) if _is_v7x() else (2 << 20)

    # Lane width: widest multiple of 128 (<= max_lanes) dividing n exactly, so
    # no pad and no trailing slice (the single biggest lever for this op).
    W = 0
    cand = max_lanes
    while cand >= 128:
        if n % cand == 0:
            W = cand
            break
        cand //= 2
    needs_pad = W == 0
    if needs_pad:
        # Truly lane-ragged input: pad < W elements below (sliced off after).
        W = max_lanes
        while W > 128 and n < W * min_rows:
            W //= 2

    rows = _cdiv(n, W)

    # Row tile: as many rows as fit the byte budget, multiple of min_rows.
    if rows <= min_rows:
        tm = rows  # block equals the full array dim
    else:
        tm = (tile_bytes // (W * itemsize)) // min_rows * min_rows
        tm = max(min_rows, min(tm, (rows // min_rows) * min_rows))

        steps = _cdiv(rows, tm)
        # Megacore (v7x): aim for >= 4 steps (2 pipelined blocks per core).
        if steps < 4 and rows >= 4 * min_rows:
            tm = min(_round_up(_cdiv(rows, 4), min_rows),
                     (rows // min_rows) * min_rows)
            steps = _cdiv(rows, tm)
        # ...and an even step count so both cores get equal work.
        if steps > 1 and steps % 2 == 1:
            tm2 = _round_up(_cdiv(rows, steps + 1), min_rows)
            if tm2 >= min_rows and _cdiv(rows, tm2) % 2 == 0:
                tm = tm2

    grid_m = _cdiv(rows, tm)

    x_flat = jnp.reshape(x, (-1,))
    if needs_pad:
        # exp(-0**2)=1 in the pad region; sliced off below, never read.
        x_flat = jnp.pad(x_flat, (0, rows * W - n))
    x2d = jnp.reshape(x_flat, (rows, W))

    call_kwargs = {}
    if donate_input and not needs_pad:
        # In-place result when the caller donates x (no extra HBM allocation).
        call_kwargs["input_output_aliases"] = {0: 0}

    out2d = pl.pallas_call(
        _exp_rbf_kernel,
        out_shape=jax.ShapeDtypeStruct((rows, W), dtype),
        grid_spec=pltpu.PrefetchScalarGridSpec(
            num_scalar_prefetch=0,
            grid=(grid_m,),
            in_specs=[pl.BlockSpec((tm, W), lambda i: (i, 0))],
            out_specs=pl.BlockSpec((tm, W), lambda i: (i, 0)),
        ),
        compiler_params=pltpu.CompilerParams(
            dimension_semantics=("parallel",),
        ),
        **call_kwargs,
    )(x2d)

    if needs_pad:
        return jnp.reshape(jnp.reshape(out2d, (-1,))[:n], orig_shape)
    return jnp.reshape(out2d, orig_shape)


if __name__ == "__main__":
    key = jax.random.PRNGKey(0)
    # Small NCHW input consistent with a generic conv-style activation usage.
    x = jax.random.normal(key, (2, 4, 16, 16), dtype=jnp.float32)

    out = exp_rbf(x)
    out = jax.block_until_ready(out)

    # Reference check against plain JAX.
    ref = jnp.exp(-(x ** 2))
    assert out.shape == x.shape
    assert out.dtype == x.dtype
    assert jnp.allclose(out, ref, atol=1e-6, rtol=1e-6)

    print("KERNEL_OK")
</pallas_src>

<mosaic_0001>
module attributes {stable_mosaic.version = 11 : i64} {
  func.func @_exp_rbf_kernel(%arg0: i32, %arg1: memref<2x1024xf32, #tpu.memory_space<vmem>>, %arg2: memref<2x1024xf32, #tpu.memory_space<vmem>>) attributes {dimension_semantics = [#tpu.dimension_semantics<parallel>], iteration_bounds = array<i64: 1>, scalar_prefetch = 0 : i64, scratch_operands = 0 : i64, tpu.core_type = #tpu.core_type<tc>, window_params = [{transform_indices = @transform_0, window_bounds = array<i64: 2, 1024>}, {transform_indices = @transform_1, window_bounds = array<i64: 2, 1024>}]} {
    %c0 = arith.constant 0 : index
    %c0_0 = arith.constant 0 : index
    %0 = vector.load %arg1[%c0, %c0_0] : memref<2x1024xf32, #tpu.memory_space<vmem>>, vector<2x1024xf32>
    %1 = arith.mulf %0, %0 : vector<2x1024xf32>
    %cst = arith.constant 0.000000e+00 : f32
    %2 = vector.broadcast %cst : f32 to vector<2x1024xf32>
    %3 = arith.subf %2, %1 : vector<2x1024xf32>
    %4 = math.exp %3 : vector<2x1024xf32>
    %c0_1 = arith.constant 0 : index
    %c0_2 = arith.constant 0 : index
    %5 = vector.load %arg2[%c0_1, %c0_2] : memref<2x1024xf32, #tpu.memory_space<vmem>>, vector<2x1024xf32>
    tpu.vector_store %arg2[%c0_1, %c0_2], %4 {strides = array<i32>} : memref<2x1024xf32, #tpu.memory_space<vmem>>, vector<2x1024xf32>,
    return
  }
  func.func @transform_0(%arg0: i32) -> (i32, i32) {
    %c0_i32 = arith.constant 0 : i32
    %c0_i32_0 = arith.constant 0 : i32
    return %arg0, %c0_i32 : i32, i32
  }
  func.func @transform_1(%arg0: i32) -> (i32, i32) {
    %c0_i32 = arith.constant 0 : i32
    %c0_i32_0 = arith.constant 0 : i32
    return %arg0, %c0_i32 : i32, i32
  }
}

</mosaic_0001>

<bundles_post_ra>
// kernel: tpu_custom_call.1
= control target key start
LH: loop header
LB: loop body
LE: loop exit
PB: predicated region body
PF: predicated region fallthrough
CT: control target
= control target key end

     0   :  { %6 = vsyncpa [#allocation3], 0  ;;  %s128_s0 = inlined_call_operand.hbm [shape: f32[2,1024], index: 0, kind: input, shape index: {}]   ;;  %s129_s1 = inlined_call_operand.hbm [shape: f32[2,1024], index: 1, kind: output, shape index: {}]  }
   0x1   :  { %7 = vsyncpa [#allocation4], 0  ;;  %s13_s8 = sshll.u32 %s128_s0, 4  ;;  %s110_s9 = smov [#allocation2]   ;;  %s14_s8 = int_to_ptr.hbm [resolvable:$true] %s13_s8 }
   0x2   :  { %s15_s10 = sshll.u32 %s110_s9, 4  ;;  %s16_s10 = int_to_ptr.vmem [resolvable:$true] %s15_s10 }
   0x3   :  { %18 = dma.hbm_to_vmem [thread:$0]  %s14_s8, 256, %s16_s10, [#allocation3]  }
   0x4   :  { %106 = dma.done.wait [#allocation3], 256  }
   0x5   :  { %107 = vsyncadd [#allocation3], 4294967040  ;;  %v23_v0 = vld [vmem:[#allocation2] sm:$0xff]  ;;  %v24_v1 = vld [vmem:[#allocation2 + $0x8] sm:$0xff]  ;;  %s111_s11 = smov [#allocation5]   ;;  %s42_s14 = sshll.u32 %s129_s1, 4  ;;  %s43_s14 = int_to_ptr.hbm [resolvable:$true] %s42_s14 }
   0x6   :  { %v25_v2 = vmul.f32 %v23_v0, %v23_v0  ;;  %v26_v3 = vmul.f32 %v24_v1, %v24_v1  ;;  %s40_s12 = sshll.u32 %s111_s11, 4  ;;  %s41_s12 = int_to_ptr.vmem [resolvable:$true] %s40_s12 }
   0x8   :  { %v27_v4 = vsub.f32 0.0, %v25_v2  ;;  %v28_v5 = vsub.f32 0.0, %v26_v3 }
   0xa   :  { %v29_v6 = vmul.f32 1.442695, %v27_v4  ;;  %v31_v7 = vmul.f32 1.442695, %v28_v5 }
   0xc   :  { %54 = vpow2.f32 %v29_v6 }
   0xd   :  { %56 = vpow2.f32 %v31_v7 }
  0x12   :  { %v55_v8 = vpop.eup %54 }
  0x13   :  { %v57_v9 = vpop.eup %56  ;;  %33 = vst [vmem:[#allocation5] sm:$0xff] %v55_v8 }
  0x14   :  { %34 = vst [vmem:[#allocation5 + $0x8] sm:$0xff] %v57_v9 }
  0x15   :  { %45 = dma.vmem_to_hbm [thread:$0]  %s41_s12, 256, %s43_s14, [#allocation4]  }
  0x16   :  { %108 = dma.done.wait [#allocation4], 256  }
  0x17   :  { %109 = vsyncadd [#allocation4], 4294967040 }
  0x18   :  { %50 = vsyncpa [#allocation3], 1 }
  0x19   :  { %51 = vsyncpa [#allocation4], 1 }

</bundles_post_ra>
